<compile_context>
chip_gen: v7x
topology: tpu7x:2x2x1
jax: 0.10.0
libtpu: 0.0.40
codegen_flags: <defaults>
</compile_context>

<pallas_src>
import math

import jax
import jax.numpy as jnp
from jax.experimental import pallas as pl
from jax.experimental.pallas import tpu as pltpu

_LANES = 128


def _round_up(n, m):
    return ((n + m - 1) // m) * m


def _vmem_capacity_bytes():
    try:
        return int(pltpu.get_tpu_info().vmem_capacity_bytes)
    except Exception:
        return 64 << 20  # conservative default (v7x per-core VMEM)


def _pick_tile(rows, x_cols, out_cols):
    """Pick a row-tile + VMEM limit for a (rows, x_cols) -> (rows, out_cols) map."""
    vmem_cap = _vmem_capacity_bytes()
    cap = 16384 if vmem_cap >= (96 << 20) else 8192      # v5e/v6e vs v7x
    tb = min(cap, _round_up(max(rows, 1), 8))
    # Keep >= ~8 grid steps on large batches (megacore occupancy on v7x plus
    # writeback pipelining) without shrinking tiles below 1024 rows.
    if rows > 8 * 1024:
        tb = min(tb, max(1024, _round_up(pl.cdiv(rows, 8), 8)))
    # Double-buffered x tile + out tile (lane-padded to 128), plus margin.
    per_step = tb * (_round_up(x_cols, _LANES) + _round_up(out_cols, _LANES)) * 4
    limit = max(32 << 20, 2 * per_step + (4 << 20))
    limit = min(limit, max(32 << 20, (vmem_cap * 3) // 4))
    return tb, limit


def _gfp_kernel(x_ref, wf_ref, ph_ref, o_ref):
    # x_ref: (TB, 1), wf_ref/ph_ref: (1, E), o_ref: (TB, E).
    # Single fused sin; cos(z) = sin(z + pi/2) covers the cat([sin, cos]).
    o_ref[...] = jnp.sin(x_ref[...] * wf_ref[...] + ph_ref[...])


def _gfp_packed_kernel(x_ref, e_ref, wf_ref, ph_ref, o_ref):
    # x_ref: (TB, pack), e_ref: (pack, 128) one-hot lane-expansion,
    # wf_ref/ph_ref: (1, 128), o_ref: (TB, 128) -> full-lane stores.
    x_exp = jnp.dot(x_ref[...], e_ref[...], preferred_element_type=jnp.float32)
    o_ref[...] = jnp.sin(x_exp * wf_ref[...] + ph_ref[...])


def gaussian_fourier_projection(x, W):
    """x: (B,) float time steps; W: (half,) fixed weights.
    Returns (B, 2*half) == concat([sin(2*pi*x*W), cos(2*pi*x*W)], -1)."""
    B = int(x.shape[0])
    half = int(W.shape[0])
    embed_dim = 2 * half

    two_pi = jnp.float32(2.0 * math.pi)
    w32 = W.astype(jnp.float32)
    # Fold the fixed 2*pi into W once; pi/2 phase turns the cos half into sin.
    w_full = jnp.concatenate([w32, w32]) * two_pi                        # (E,)
    phase = jnp.concatenate([jnp.zeros((half,), jnp.float32),
                             jnp.full((half,), jnp.float32(math.pi / 2.0))])
    x32 = x.astype(jnp.float32)

    cost = pl.CostEstimate(
        flops=3 * B * embed_dim,
        transcendentals=B * embed_dim,
        bytes_accessed=4 * (B + 2 * embed_dim + B * embed_dim),
    )

    use_packed = (embed_dim < _LANES and _LANES % embed_dim == 0
                  and B > 0 and B % (_LANES // embed_dim) == 0)

    if use_packed:
        pack = _LANES // embed_dim
        rows = B // pack
        tb, vmem_limit = _pick_tile(rows, pack, _LANES)

        x2 = x32.reshape(rows, pack)
        wf2 = jnp.tile(w_full, pack).reshape(1, _LANES)
        ph2 = jnp.tile(phase, pack).reshape(1, _LANES)
        # One-hot expansion matrix: expand[j, j*E:(j+1)*E] = 1.
        lane = jax.lax.broadcasted_iota(jnp.int32, (pack, _LANES), 1)
        row = jax.lax.broadcasted_iota(jnp.int32, (pack, _LANES), 0)
        expand = (lane // embed_dim == row).astype(jnp.float32)

        out = pl.pallas_call(
            _gfp_packed_kernel,
            out_shape=jax.ShapeDtypeStruct((rows, _LANES), jnp.float32),
            grid=(pl.cdiv(rows, tb),),
            in_specs=[
                pl.BlockSpec((tb, pack), lambda i: (i, 0)),
                pl.BlockSpec((pack, _LANES), lambda i: (0, 0)),
                pl.BlockSpec((1, _LANES), lambda i: (0, 0)),
                pl.BlockSpec((1, _LANES), lambda i: (0, 0)),
            ],
            out_specs=pl.BlockSpec((tb, _LANES), lambda i: (i, 0)),
            compiler_params=pltpu.CompilerParams(
                dimension_semantics=("parallel",),
                vmem_limit_bytes=vmem_limit,
            ),
            cost_estimate=cost,
        )(x2, expand, wf2, ph2)
        # Row-major (rows, 128) is bit-identical to (B, embed_dim): free reshape.
        return out.reshape(B, embed_dim)

    # General path (embed_dim >= 128, or B not a multiple of the pack factor):
    # still single-sin, ragged final block, no pad / slice.
    rows = B
    tb, vmem_limit = _pick_tile(rows, 1, embed_dim)
    x2 = x32.reshape(rows, 1)
    wf2 = w_full.reshape(1, embed_dim)
    ph2 = phase.reshape(1, embed_dim)

    return pl.pallas_call(
        _gfp_kernel,
        out_shape=jax.ShapeDtypeStruct((rows, embed_dim), jnp.float32),
        grid=(pl.cdiv(rows, tb),),
        in_specs=[
            pl.BlockSpec((tb, 1), lambda i: (i, 0)),
            pl.BlockSpec((1, embed_dim), lambda i: (0, 0)),
            pl.BlockSpec((1, embed_dim), lambda i: (0, 0)),
        ],
        out_specs=pl.BlockSpec((tb, embed_dim), lambda i: (i, 0)),
        compiler_params=pltpu.CompilerParams(
            dimension_semantics=("parallel",),
            vmem_limit_bytes=vmem_limit,
        ),
        cost_estimate=cost,
    )(x2, wf2, ph2)


def _reference(x, W):
    proj = x[:, None] * W[None, :] * (2.0 * math.pi)
    return jnp.concatenate([jnp.sin(proj), jnp.cos(proj)], axis=-1)


if __name__ == "__main__":
    # Small, deterministic setup consistent with the module.
    embed_dim = 32
    scale = 30.0

    key = jax.random.PRNGKey(0)
    k_w, k_x1, k_x2 = jax.random.split(key, 3)

    # Deterministic parameter init (mirrors torch.randn(embed_dim//2) * scale).
    W = jax.random.normal(k_w, (embed_dim // 2,), dtype=jnp.float32) * scale

    # Case 1: B multiple of the 128/embed_dim pack factor -> lane-packed path.
    x1 = jax.random.uniform(k_x1, (8,), dtype=jnp.float32)
    out1 = jax.block_until_ready(gaussian_fourier_projection(x1, W))
    ref1 = _reference(x1, W)
    assert out1.shape == (8, embed_dim)
    assert jnp.allclose(out1, ref1, atol=1e-3, rtol=1e-3), float(
        jnp.max(jnp.abs(out1 - ref1)))

    # Case 2: ragged batch (B=6) -> general path with a ragged final block
    # (no wrapper pad / slice).
    x2 = jax.random.uniform(k_x2, (6,), dtype=jnp.float32)
    out2 = jax.block_until_ready(gaussian_fourier_projection(x2, W))
    ref2 = _reference(x2, W)
    assert out2.shape == (6, embed_dim)
    assert jnp.allclose(out2, ref2, atol=1e-3, rtol=1e-3), float(
        jnp.max(jnp.abs(out2 - ref2)))

    print("KERNEL_OK")
</pallas_src>

<mosaic_0001>
module attributes {stable_mosaic.version = 11 : i64} {
  func.func @_gfp_packed_kernel(%arg0: i32, %arg1: memref<8x4xf32, #tpu.memory_space<vmem>>, %arg2: memref<4x128xf32, #tpu.memory_space<vmem>>, %arg3: memref<1x128xf32, #tpu.memory_space<vmem>>, %arg4: memref<1x128xf32, #tpu.memory_space<vmem>>, %arg5: memref<8x128xf32, #tpu.memory_space<vmem>>) attributes {dimension_semantics = [#tpu.dimension_semantics<parallel>], iteration_bounds = array<i64: 1>, scalar_prefetch = 0 : i64, scratch_operands = 0 : i64, tpu.core_type = #tpu.core_type<tc>, window_params = [{transform_indices = @transform_0, window_bounds = array<i64: 8, 4>}, {pipeline_mode = #tpu.pipeline_mode<synchronous>, transform_indices = @transform_1, window_bounds = array<i64: 4, 128>}, {pipeline_mode = #tpu.pipeline_mode<synchronous>, transform_indices = @transform_2, window_bounds = array<i64: 1, 128>}, {pipeline_mode = #tpu.pipeline_mode<synchronous>, transform_indices = @transform_3, window_bounds = array<i64: 1, 128>}, {transform_indices = @transform_4, window_bounds = array<i64: 8, 128>}]} {
    %c0 = arith.constant 0 : index
    %c0_0 = arith.constant 0 : index
    %0 = vector.load %arg1[%c0, %c0_0] : memref<8x4xf32, #tpu.memory_space<vmem>>, vector<8x4xf32>
    %c0_1 = arith.constant 0 : index
    %c0_2 = arith.constant 0 : index
    %1 = vector.load %arg2[%c0_1, %c0_2] : memref<4x128xf32, #tpu.memory_space<vmem>>, vector<4x128xf32>
    %cst = arith.constant dense<0.000000e+00> : vector<8x128xf32>
    %2 = tpu.matmul %0, %1, %cst {dimension_numbers = #tpu.dot_dimension_numbers<[1], [0], [0], [1], [0, 0, 1, 1], [], []>} : vector<8x4xf32>, vector<4x128xf32>, vector<8x128xf32> -> vector<8x128xf32>
    %c0_3 = arith.constant 0 : index
    %c0_4 = arith.constant 0 : index
    %3 = vector.load %arg3[%c0_3, %c0_4] : memref<1x128xf32, #tpu.memory_space<vmem>>, vector<1x128xf32>
    %4 = vector.broadcast %3 : vector<1x128xf32> to vector<8x128xf32>
    %5 = arith.mulf %2, %4 : vector<8x128xf32>
    %c0_5 = arith.constant 0 : index
    %c0_6 = arith.constant 0 : index
    %6 = vector.load %arg4[%c0_5, %c0_6] : memref<1x128xf32, #tpu.memory_space<vmem>>, vector<1x128xf32>
    %7 = vector.broadcast %6 : vector<1x128xf32> to vector<8x128xf32>
    %8 = arith.addf %5, %7 : vector<8x128xf32>
    %9 = math.sin %8 : vector<8x128xf32>
    %c0_7 = arith.constant 0 : index
    %c0_8 = arith.constant 0 : index
    %10 = vector.load %arg5[%c0_7, %c0_8] : memref<8x128xf32, #tpu.memory_space<vmem>>, vector<8x128xf32>
    tpu.vector_store %arg5[%c0_7, %c0_8], %9 {strides = array<i32>} : memref<8x128xf32, #tpu.memory_space<vmem>>, vector<8x128xf32>,
    return
  }
  func.func @transform_0(%arg0: i32) -> (i32, i32) {
    %c0_i32 = arith.constant 0 : i32
    %c0_i32_0 = arith.constant 0 : i32
    return %arg0, %c0_i32 : i32, i32
  }
  func.func @transform_1(%arg0: i32) -> (i32, i32) {
    %c0_i32 = arith.constant 0 : i32
    %c0_i32_0 = arith.constant 0 : i32
    %c0_i32_1 = arith.constant 0 : i32
    return %c0_i32, %c0_i32_0 : i32, i32
  }
  func.func @transform_2(%arg0: i32) -> (i32, i32) {
    %c0_i32 = arith.constant 0 : i32
    %c0_i32_0 = arith.constant 0 : i32
    %c0_i32_1 = arith.constant 0 : i32
    return %c0_i32, %c0_i32_0 : i32, i32
  }
  func.func @transform_3(%arg0: i32) -> (i32, i32) {
    %c0_i32 = arith.constant 0 : i32
    %c0_i32_0 = arith.constant 0 : i32
    %c0_i32_1 = arith.constant 0 : i32
    return %c0_i32, %c0_i32_0 : i32, i32
  }
  func.func @transform_4(%arg0: i32) -> (i32, i32) {
    %c0_i32 = arith.constant 0 : i32
    %c0_i32_0 = arith.constant 0 : i32
    return %arg0, %c0_i32 : i32, i32
  }
}

</mosaic_0001>

<bundles_post_ra>
// kernel: tpu_custom_call.1
= control target key start
LH: loop header
LB: loop body
LE: loop exit
PB: predicated region body
PF: predicated region fallthrough
CT: control target
= control target key end

     0   :  { %9 = vsyncpa [#allocation3], 0  ;;  %s478_s0 = inlined_call_operand.hbm [shape: f32[2,4], index: 0, kind: input, shape index: {}]   ;;  %s479_s1 = inlined_call_operand.hbm [shape: f32[4,128], index: 1, kind: input, shape index: {}]   ;;  %s480_s2 = inlined_call_operand.vmem [shape: f32[1,128], index: 2, kind: input, shape index: {}]   ;;  %s481_s3 = inlined_call_operand.vmem [shape: f32[1,128], index: 3, kind: input, shape index: {}]   ;;  %s482_s4 = inlined_call_operand.hbm [shape: f32[2,128], index: 4, kind: output, shape index: {}]  }
   0x1   :  { %10 = vsyncpa [#allocation6], 0 }
   0x2   :  { %11 = vsyncpa [#allocation4], 0 }
   0x3   :  { %16 = vsyncadd [#allocation3], 96  ;;  %s371_s15 = smov [#allocation2]   ;;  %s299_s19 = scalar_lea.hbm %s478_s0, 32 }
   0x4   :  { %s17_s16 = sshll.u32 %s371_s15, 4  ;;  %p300_p0 = scmp.ne.s32.totalorder %s478_s0, %s299_s19  ;;  %s18_s16 = int_to_ptr.vmem [resolvable:$true] %s17_s16 }
   0x5   :  { %p303_p1 = scmp.lt.u32.totalorder %s299_s19, %s478_s0 }
   0x7   :  { %p305_p2 = pnand %p303_p1, %p300_p0 }
   0x9   :  { %308 = shalt.err (!%p305_p2)
}
   0xa   :  { %s309_s24 = scalar_lea.vmem %s18_s16, 32  ;;  %s313_s25 = scalar_lea.vmem %s18_s16, 128 }
   0xb   :  { %p310_p3 = scmp.ne.s32.totalorder %s18_s16, %s309_s24  ;;  %p314_p4 = scmp.lt.s32.totalorder %s18_s16, %s18_s16 }
   0xc   :  { %p315_p5 = scmp.lt.s32.totalorder %s313_s25, %s309_s24 }
   0xe   :  { %p316_p6 = por %p315_p5, %p314_p4 }
  0x10   :  { %p317_p7 = pnand %p316_p6, %p310_p3 }
  0x12   :  { %320 = shalt.err (!%p317_p7)
}
  0x13   :  { %s372_s26 = smov 32   ;;  %s373_s27 = smov 2  }
  0x14   :  { %23 = dma.hbm_to_vmem [thread:$0]  %s478_s0, 32, %s18_s16, [#allocation3], %s372_s26, %s372_s26, %s373_s27  }
  0x15   :  { %s374_s30 = smov [#allocation5]   ;;  %s321_s8 = scalar_lea.hbm %s479_s1, 64 }
  0x16   :  { %s30_s5 = sshll.u32 %s374_s30, 4  ;;  %p322_p8 = scmp.ne.s32.totalorder %s479_s1, %s321_s8  ;;  %s31_s5 = int_to_ptr.vmem [resolvable:$true] %s30_s5 }
  0x17   :  { %p325_p9 = scmp.lt.u32.totalorder %s321_s8, %s479_s1 }
  0x19   :  { %p327_p10 = pnand %p325_p9, %p322_p8 }
  0x1b   :  { %330 = shalt.err (!%p327_p10)
}
  0x1c   :  { %s331_s13 = scalar_lea.vmem %s31_s5, 64  ;;  %p336_p12 = scmp.lt.s32.totalorder %s31_s5, %s31_s5 }
  0x1d   :  { %p332_p11 = scmp.ne.s32.totalorder %s31_s5, %s331_s13  ;;  %p337_p13 = scmp.lt.s32.totalorder %s331_s13, %s331_s13 }
  0x1f   :  { %p338_p0 = por %p337_p13, %p336_p12 }
  0x21   :  { %p339_p1 = pnand %p338_p0, %p332_p11 }
  0x23   :  { %342 = shalt.err (!%p339_p1)
}
  0x24   :  { %33 = dma.hbm_to_vmem [thread:$0]  %s479_s1, 64, %s31_s5, [#allocation6]  }
  0x25   :  { %365 = dma.done.wait [#allocation3], 128  }
  0x26   :  { %366 = vsyncadd [#allocation3], 4294967168 }
  0x27   :  { %367 = dma.done.wait [#allocation6], 64  }
  0x28   :  { %368 = vsyncadd [#allocation6], 4294967232  ;;  %v375_v0 = vmov 0.0   ;;  %vm376_vm0 = vmmov 0   ;;  %vm50_vm1 = vcmask 1043456   ;;  %vm46_vm2 = vcmask 31744  }
  0x29   :  { %273 = vmatprep.subr.mxu0 %v375_v0  ;;  %275 = vmatprep.mubr.msk.f32.mxu0 %vm376_vm0, %v375_v0  ;;  %v45_v1 = vld [vmem:[#allocation5] sm:$0xf]  ;;  %v44_v2 = vld [vmem:[#allocation2] sm:$0xff]  ;;  %v377_v19 = vmov 683565275  }
  0x2a   :  { %274 = vmatpush3.msk.msra.mxu0 %vm50_vm1, %v45_v1  ;;  %v265_v3 = vld [vmem:[%s480_s2] ss:$0 sm:$0xff]  ;;  %v378_v21 = vmov 2475754826   ;;  %v379_v24 = vmov 2131351028  }
  0x2b   :  { %276 = vmatmul.mubr.msk.f32.vlgmr.msra.gmra.mrb[0].mxu0 %vm46_vm2, %v44_v2  ;;  %v266_v5 = vld [vmem:[%s481_s3] ss:$0 sm:$0xff]  ;;  %v380_v27 = vmov 2102212464   ;;  %v381_v30 = vmov 920167782  }
  0x2c   :  { %v382_v33 = vmov 1326507024  }
  0xfe   :  { %v120_v4 = vpop.f32.mrb[0].mxu0 }
  0xff   :  { %v131_v6 = vmul.f32 %v265_v3, %v120_v4  ;;  %v277_v7 = vpop.f32.mrb[1].mxu0 }
 0x101   :  { %v442_v8 = vadd.f32 %v266_v5, %v131_v6 }
 0x103   :  { %v143_v9 = vand.u32 2139095040, %v442_v8  ;;  %v140_v13 = vand.u32 2147483647, %v442_v8  ;;  %vm142_vm10 = vcmp.lt.s32.totalorder %v442_v8, 0  ;;  %vm232_vm15 = vweird.f32 %v442_v8 }
 0x105   :  { %v144_v10 = vshrl.u32 %v143_v9, 23  ;;  %v147_v16 = vand.u32 8388607, %v140_v13  ;;  %vm141_vm11 = vcmp.le.f32.partialorder %v140_v13, 0.7853982 }
 0x107   :  { %v267_v11 = vadd.s32 4294967169, %v144_v10  ;;  %v148_v35 = vor.u32 8388608, %v147_v16 }
 0x109   :  { %v150_v12 = vadd.s32 1, %v267_v11  ;;  %v188_v49 = vshll.u32 %v148_v35, 8 }
 0x10b   :  { %vm151_vm3 = vcmp.gt.s32.totalorder %v150_v12, 0 }
 0x10c   :  { %v152_v14 = vsel %vm151_vm3, %v150_v12, 0 }
 0x10d   :  { %v154_v15 = vand.u32 31, %v152_v14  ;;  %v153_v18 = vshrl.u32 %v152_v14, 5 }
 0x10f   :  { %v155_v17 = vsub.s32 32, %v154_v15  ;;  %v157_v20 = vshll.u32 %v377_v19, %v154_v15  ;;  %v160_v22 = vshll.u32 %v378_v21, %v154_v15  ;;  %v163_v26 = vshll.u32 %v379_v24, %v154_v15 }
 0x110   :  { %v166_v29 = vshll.u32 %v380_v27, %v154_v15  ;;  %v169_v32 = vshll.u32 %v381_v30, %v154_v15  ;;  %vm172_vm4 = vcmp.lt.s32.totalorder %v153_v18, 1  ;;  %vm175_vm5 = vcmp.lt.s32.totalorder %v153_v18, 4 }
 0x111   :  { %v158_v23 = vshrl.u32 %v378_v21, %v155_v17  ;;  %v161_v25 = vshrl.u32 %v379_v24, %v155_v17  ;;  %v164_v28 = vshrl.u32 %v380_v27, %v155_v17  ;;  %v167_v31 = vshrl.u32 %v381_v30, %v155_v17 }
 0x112   :  { %v170_v34 = vshrl.u32 %v382_v33, %v155_v17  ;;  %v156_v44 = vshrl.u32 %v377_v19, %v155_v17  ;;  %vm174_vm6 = vcmp.lt.s32.totalorder %v153_v18, 3  ;;  %vm173_vm7 = vcmp.lt.s32.totalorder %v153_v18, 2 }
 0x113   :  { %v159_v36 = vor.u32 %v158_v23, %v157_v20  ;;  %v162_v37 = vor.u32 %v161_v25, %v160_v22  ;;  %v165_v38 = vor.u32 %v164_v28, %v163_v26  ;;  %v168_v39 = vor.u32 %v167_v31, %v166_v29 }
 0x114   :  { %v171_v40 = vor.u32 %v170_v34, %v169_v32 }
 0x115   :  { %v177_v41 = vsel %vm175_vm5, %v165_v38, 2102212464  ;;  %v180_v42 = vsel %vm172_vm4, %v159_v36, %v162_v37  ;;  %v184_v43 = vsel %vm172_vm4, %v162_v37, %v165_v38  ;;  %v181_v45 = vsel %vm175_vm5, %v168_v39, 920167782 }
 0x116   :  { %v185_v46 = vsel %vm175_vm5, %v171_v40, 1326507024  ;;  %v182_v47 = vsel %vm174_vm6, %v165_v38, %v181_v45  ;;  %v176_v50 = vsel %vm172_vm4, %v156_v44, %v159_v36  ;;  %v178_v51 = vsel %vm174_vm6, %v162_v37, %v177_v41 }
 0x117   :  { %v186_v48 = vsel %vm174_vm6, %v168_v39, %v185_v46  ;;  %v183_v52 = vsel %vm173_vm7, %v180_v42, %v182_v47  ;;  %v179_v58 = vsel %vm173_vm7, %v176_v50, %v178_v51 }
 0x118   :  { %v187_v53 = vsel %vm173_vm7, %v184_v43, %v186_v48  ;;  %v451_v56 = vmul.u32.u64.low %v188_v49, %v183_v52  ;;  %v452_v57 = vmul.u32.u64.high %v188_v49, %v183_v52, %v451_v56  ;;  %v195_v60 = vmul.u32 %v188_v49, %v179_v58 }
 0x119   :  { %v448_v54 = vmul.u32.u64.low %v188_v49, %v187_v53  ;;  %v449_v55 = vmul.u32.u64.high %v188_v49, %v187_v53, %v448_v54 }
 0x11a   :  { %v198_v59 = vadd.s32 1, %v452_v57 }
 0x11b   :  { %vm197_vm8 = vc.u32 %v449_v55, %v451_v56  ;;  %v196_v9 = vadd.s32 %v451_v56, %v449_v55 }
 0x11c   :  { %v199_v61 = vsel %vm197_vm8, %v198_v59, %v452_v57 }
 0x11d   :  { %v200_v62 = vadd.s32 %v199_v61, %v195_v60 }
 0x11f   :  { %v201_v63 = vadd.s32 536870912, %v200_v62 }
 0x121   :  { %v202_v0 = vshrl.u32 %v201_v63, 30 }
 0x123   :  { %v203_v1 = vshll.u32 %v202_v0, 30  ;;  %v226_v22 = vsub.s32 4, %v202_v0 }
 0x125   :  { %v204_v2 = vsub.s32 %v200_v62, %v203_v1  ;;  %v227_v25 = vsel %vm142_vm10, %v226_v22, %v202_v0 }
 0x126   :  { %v229_v27 = vsel %vm141_vm11, 0, %v227_v25 }
 0x127   :  { %v206_v3 = vsub.s32 0, %v204_v2  ;;  %v233_v28 = vadd.s32 3, %v229_v27 }
 0x129   :  { %v268_v4 = vmin.u32 %v206_v3, %v204_v2  ;;  %v234_v29 = vand.u32 3, %v233_v28 }
 0x12b   :  { %v208_v5 = vclz %v268_v4  ;;  %vm239_vm12 = vcmp.eq.s32.totalorder %v234_v29, 2  ;;  %vm236_vm13 = vcmp.eq.s32.totalorder %v234_v29, 0  ;;  %vm235_vm14 = vcmp.lt.s32.totalorder %v234_v29, 2 }
 0x12d   :  { %v269_v6 = vadd.s32 4294967294, %v208_v5 }
 0x12f   :  { %vm270_vm9 = vcmp.lt.s32.totalorder %v269_v6, 0 }
 0x130   :  { %v211_v7 = vsel %vm270_vm9, 0, %v269_v6 }
 0x131   :  { %v212_v10 = vsub.s32 32, %v211_v7  ;;  %v216_v11 = vsub.s32 4294967266, %v211_v7  ;;  %v213_v12 = vshll.u32 %v204_v2, %v211_v7 }
 0x133   :  { %v214_v14 = vshrl.u32 %v196_v9, %v212_v10  ;;  %v217_v15 = vadd.s32 127, %v216_v11 }
 0x135   :  { %v215_v16 = vor.u32 %v214_v14, %v213_v12  ;;  %v218_v17 = vshll.u32 %v217_v15, 23 }
 0x137   :  { %v219_v18 = vor.u32 4788187, %v218_v17  ;;  %v222_v20 = vcvt.s32.f32 %v215_v16 }
 0x139   :  { %v220_v19 = vand.u32 2147483647, %v219_v18 }
 0x13b   :  { %v223_v21 = vmul.f32 %v222_v20, %v220_v19 }
 0x13d   :  { %v224_v23 = vxor.u32 2147483648, %v223_v21 }
 0x13f   :  { %v225_v24 = vsel %vm142_vm10, %v224_v23, %v223_v21 }
 0x140   :  { %v228_v26 = vsel %vm141_vm11, %v442_v8, %v225_v24 }
 0x141   :  { %295 = vcosq.f32 %v228_v26 }
 0x142   :  { %297 = vsinq.f32 %v228_v26 }
 0x14b   :  { %v296_v30 = vpop.eup %295 }
 0x14c   :  { %v298_v31 = vpop.eup %297  ;;  %v240_v32 = vxor.u32 2147483648, %v296_v30 }
 0x14d   :  { %v237_v33 = vxor.u32 2147483648, %v298_v31 }
 0x14e   :  { %v241_v34 = vsel %vm239_vm12, %v240_v32, %v298_v31 }
 0x14f   :  { %v238_v35 = vsel %vm236_vm13, %v296_v30, %v237_v33 }
 0x150   :  { %v242_v13 = vsel %vm235_vm14, %v238_v35, %v241_v34 }
 0x151   :  { %v243_v36 = vsel %vm232_vm15, nan, %v242_v13 }
 0x152   :  { %244 = vst [vmem:[#allocation7] sm:$0xff] %v243_v36 }
 0x153   :  { %249 = vsyncadd [#allocation4], 96  ;;  %s383_s2 = smov [#allocation7]  }
 0x154   :  { %s250_s3 = sshll.u32 %s383_s2, 4  ;;  %s251_s3 = int_to_ptr.vmem [resolvable:$true] %s250_s3 }
 0x155   :  { %s343_s18 = scalar_lea.vmem %s251_s3, 32  ;;  %s347_s19 = scalar_lea.vmem %s251_s3, 128 }
 0x156   :  { %p344_p2 = scmp.ne.s32.totalorder %s251_s3, %s343_s18  ;;  %p348_p3 = scmp.lt.s32.totalorder %s251_s3, %s251_s3 }
 0x157   :  { %p349_p4 = scmp.lt.s32.totalorder %s347_s19, %s343_s18 }
 0x159   :  { %p350_p5 = por %p349_p4, %p348_p3 }
 0x15b   :  { %p351_p6 = pnand %p350_p5, %p344_p2 }
 0x15d   :  { %354 = shalt.err (!%p351_p6)
}
 0x15e   :  { %s355_s22 = scalar_lea.hbm %s482_s4, 32 }
 0x15f   :  { %p356_p7 = scmp.ne.s32.totalorder %s482_s4, %s355_s22  ;;  %p359_p8 = scmp.lt.u32.totalorder %s355_s22, %s482_s4 }
 0x161   :  { %p361_p9 = pnand %p359_p8, %p356_p7 }
 0x163   :  { %364 = shalt.err (!%p361_p9)
}
 0x164   :  { %256 = dma.vmem_to_hbm [thread:$0]  %s251_s3, 32, %s482_s4, [#allocation4], %s372_s26, %s372_s26, %s373_s27  }
 0x165   :  { %369 = dma.done.wait [#allocation4], 128  }
 0x166   :  { %370 = vsyncadd [#allocation4], 4294967168 }
 0x167   :  { %260 = vsyncpa [#allocation3], 1 }
 0x168   :  { %261 = vsyncpa [#allocation6], 1 }
 0x169   :  { %262 = vsyncpa [#allocation4], 1 }

</bundles_post_ra>
